<compile_context>
chip_gen: v5e
topology: v5e:2x2
jax: 0.10.0
libtpu: 0.0.40
codegen_flags: <defaults>
</compile_context>

<pallas_src>
import math
from functools import partial

import jax
import jax.numpy as jnp
from jax import lax
from jax.experimental import pallas as pl
from jax.experimental.pallas import tpu as pltpu


def _equal_linear_kernel(*refs, scale, use_bias):
    """Grid = (B tiles, N tiles, K tiles); K (reduction) is the last axis."""
    if use_bias:
        x_ref, w_ref, b_ref, o_ref, acc_ref = refs
    else:
        x_ref, w_ref, o_ref, acc_ref = refs
        b_ref = None

    k = pl.program_id(2)

    @pl.when(k == 0)
    def _init():
        acc_ref[...] = jnp.zeros_like(acc_ref)

    # (TB, TK) x (TN, TK) contracted over K -> (TB, TN); MXU-native, no W copy,
    # no transpose, operands kept in their storage dtype.
    acc_ref[...] += lax.dot_general(
        x_ref[...], w_ref[...],
        dimension_numbers=(((1,), (1,)), ((), ())),
        preferred_element_type=jnp.float32,
    )

    @pl.when(k == pl.num_programs(2) - 1)
    def _finalize():
        out = acc_ref[...] * scale          # scale folded into the tiny output
        if use_bias:
            out = out + b_ref[...].astype(jnp.float32)   # bias already * lr_mul
        o_ref[...] = out.astype(o_ref.dtype)


def _round_up(v, m):
    return ((v + m - 1) // m) * m


def _pick_tile(dim, candidates):
    for c in candidates:
        if dim % c == 0:
            return c
    return dim


def equal_linear(x, weight, bias, *, lr_mul=1.0, activation=None,
                 compute_dtype=None):
    """Pallas implementation of EqualLinear.forward.

    x       : (B, ...) -- flattened to (B, in_dim) like input.view(B, -1)
    weight  : (out_dim, in_dim)
    bias    : (out_dim,) or None
    compute_dtype : optional dtype (e.g. jnp.bfloat16) to cast x / W to before
                    the matmul; accumulation stays f32.
    """
    B = x.shape[0]
    x2 = x.reshape(B, -1)                         # glue: the .view(B, -1)
    out_dim, in_dim = weight.shape
    assert x2.shape[1] == in_dim, (x2.shape, weight.shape)

    # NOTE: scale uses the ORIGINAL in_dim, independent of any padding below.
    scale = 1.0 / math.sqrt(in_dim) * lr_mul
    # PyTorch branch: with activation, bias is NOT added inside F.linear.
    use_bias = (bias is not None) and (activation is None)

    if compute_dtype is not None:
        x2 = x2.astype(compute_dtype)
        weight = weight.astype(compute_dtype)

    out_dtype = x2.dtype

    # --- pad to lane/sublane-dense shapes (zero padding is exact for matmul) ---
    sublane = 16 if x2.dtype == jnp.bfloat16 else 8
    B_pad = _round_up(B, sublane)
    K_pad = _round_up(in_dim, 128)
    N_pad = _round_up(out_dim, 128)

    x_p = jnp.pad(x2, ((0, B_pad - B), (0, K_pad - in_dim)))
    w_p = jnp.pad(weight, ((0, N_pad - out_dim), (0, K_pad - in_dim)))

    # --- tile sizes (bounded so 2x double-buffered tiles fit v7x VMEM easily) ---
    TB = _pick_tile(B_pad, (128, 64, 32, 16, 8))
    TN = _pick_tile(N_pad, (256, 128))            # fill 256-wide MXU when possible
    TK = _pick_tile(K_pad, (512, 256, 128))

    grid = (B_pad // TB, N_pad // TN, K_pad // TK)

    in_specs = [
        pl.BlockSpec((TB, TK), lambda b, n, k: (b, k)),
        pl.BlockSpec((TN, TK), lambda b, n, k: (n, k)),
    ]
    args = [x_p, w_p]

    if use_bias:
        # Pre-scale by lr_mul in the wrapper; kernel only adds.
        b_p = jnp.pad((bias * lr_mul).astype(jnp.float32), (0, N_pad - out_dim))
        b_p = b_p.reshape(1, N_pad)
        in_specs.append(pl.BlockSpec((1, TN), lambda b, n, k: (0, n)))
        args.append(b_p)

    flops = 2 * B_pad * N_pad * K_pad
    bytes_accessed = (x_p.size * x_p.dtype.itemsize
                      + w_p.size * w_p.dtype.itemsize
                      + B_pad * N_pad * jnp.dtype(out_dtype).itemsize
                      + (N_pad * 4 if use_bias else 0))

    kernel = partial(_equal_linear_kernel, scale=scale, use_bias=use_bias)

    out_p = pl.pallas_call(
        kernel,
        out_shape=jax.ShapeDtypeStruct((B_pad, N_pad), out_dtype),
        grid_spec=pltpu.PrefetchScalarGridSpec(
            num_scalar_prefetch=0,
            grid=grid,
            in_specs=in_specs,
            out_specs=pl.BlockSpec((TB, TN), lambda b, n, k: (b, n)),
            scratch_shapes=[pltpu.VMEM((TB, TN), jnp.float32)],
        ),
        compiler_params=pltpu.CompilerParams(
            dimension_semantics=("parallel", "parallel", "arbitrary"),
        ),
        cost_estimate=pl.CostEstimate(
            flops=flops, transcendentals=0, bytes_accessed=bytes_accessed),
    )(*args)

    # TODO(synk): full StyleGAN EqualLinear applies fused_leaky_relu(out, bias*lr_mul)
    # in the activation branch; the given forward() returns the raw linear, so we do too.
    return out_p[:B, :out_dim]


if __name__ == "__main__":
    key = jax.random.PRNGKey(0)
    kx, kw = jax.random.split(key)

    # Small shapes consistent with the module: input (B, 4, 8) flattens to in_dim=32.
    B, C, S = 2, 4, 8
    in_dim = C * S
    out_dim = 16
    lr_mul = 0.5
    bias_init = 0.1

    x = jax.random.normal(kx, (B, C, S), dtype=jnp.float32)

    # Deterministic parameter init mirroring __init__:
    #   weight ~ randn(out_dim, in_dim) / lr_mul ; bias = full(out_dim, bias_init)
    weight = jax.random.normal(kw, (out_dim, in_dim), dtype=jnp.float32) / lr_mul
    bias = jnp.full((out_dim,), bias_init, dtype=jnp.float32)

    scale = 1.0 / math.sqrt(in_dim) * lr_mul

    # --- no-activation branch (linear + bias*lr_mul) ---
    out = equal_linear(x, weight, bias, lr_mul=lr_mul, activation=None)
    out = jax.block_until_ready(out)
    ref = x.reshape(B, -1) @ (weight * scale).T + bias * lr_mul
    assert out.shape == (B, out_dim)
    assert jnp.allclose(out, ref, atol=1e-5, rtol=1e-5), float(jnp.abs(out - ref).max())

    # --- activation branch (bias-less linear, per the reference forward) ---
    out_act = equal_linear(x, weight, bias, lr_mul=lr_mul, activation="fused_lrelu")
    out_act = jax.block_until_ready(out_act)
    ref_act = x.reshape(B, -1) @ (weight * scale).T
    assert jnp.allclose(out_act, ref_act, atol=1e-5, rtol=1e-5), \
        float(jnp.abs(out_act - ref_act).max())

    print("KERNEL_OK")
</pallas_src>

<mosaic_0001>
module attributes {stable_mosaic.version = 11 : i64} {
  func.func @_equal_linear_kernel(%arg0: i32, %arg1: i32, %arg2: i32, %arg3: memref<8x128xf32, #tpu.memory_space<vmem>>, %arg4: memref<128x128xf32, #tpu.memory_space<vmem>>, %arg5: memref<1x128xf32, #tpu.memory_space<vmem>>, %arg6: memref<8x128xf32, #tpu.memory_space<vmem>>, %arg7: memref<8x128xf32, #tpu.memory_space<vmem>>) attributes {dimension_semantics = [#tpu.dimension_semantics<parallel>, #tpu.dimension_semantics<parallel>, #tpu.dimension_semantics<arbitrary>], iteration_bounds = array<i64: 1, 1, 1>, scalar_prefetch = 0 : i64, scratch_operands = 1 : i64, tpu.core_type = #tpu.core_type<tc>, window_params = [{transform_indices = @transform_0, window_bounds = array<i64: 8, 128>}, {transform_indices = @transform_1, window_bounds = array<i64: 128, 128>}, {transform_indices = @transform_2, window_bounds = array<i64: 1, 128>}, {transform_indices = @transform_3, window_bounds = array<i64: 8, 128>}]} {
    %c0_i32 = arith.constant 0 : i32
    %0 = arith.cmpi eq, %arg2, %c0_i32 : i32
    %1 = arith.extui %0 : i1 to i32
    %c0_i32_0 = arith.constant 0 : i32
    %2 = arith.cmpi ne, %1, %c0_i32_0 : i32
    scf.if %2 {
      %cst_10 = arith.constant 0.000000e+00 : f32
      %12 = vector.broadcast %cst_10 : f32 to vector<8x128xf32>
      %c0_11 = arith.constant 0 : index
      %c0_12 = arith.constant 0 : index
      %13 = vector.load %arg7[%c0_11, %c0_12] : memref<8x128xf32, #tpu.memory_space<vmem>>, vector<8x128xf32>
      tpu.vector_store %arg7[%c0_11, %c0_12], %12 {strides = array<i32>} : memref<8x128xf32, #tpu.memory_space<vmem>>, vector<8x128xf32>,
    } else {
    }
    %c0 = arith.constant 0 : index
    %c0_1 = arith.constant 0 : index
    %3 = vector.load %arg7[%c0, %c0_1] : memref<8x128xf32, #tpu.memory_space<vmem>>, vector<8x128xf32>
    %c0_2 = arith.constant 0 : index
    %c0_3 = arith.constant 0 : index
    %4 = vector.load %arg3[%c0_2, %c0_3] : memref<8x128xf32, #tpu.memory_space<vmem>>, vector<8x128xf32>
    %c0_4 = arith.constant 0 : index
    %c0_5 = arith.constant 0 : index
    %5 = vector.load %arg4[%c0_4, %c0_5] : memref<128x128xf32, #tpu.memory_space<vmem>>, vector<128x128xf32>
    %cst = arith.constant dense<0.000000e+00> : vector<8x128xf32>
    %6 = tpu.matmul %4, %5, %cst {dimension_numbers = #tpu.dot_dimension_numbers<[1], [1], [0], [0], [0, 0, 1, 0], [], []>} : vector<8x128xf32>, vector<128x128xf32>, vector<8x128xf32> -> vector<8x128xf32>
    %7 = arith.addf %3, %6 : vector<8x128xf32>
    %c0_6 = arith.constant 0 : index
    %c0_7 = arith.constant 0 : index
    %8 = vector.load %arg7[%c0_6, %c0_7] : memref<8x128xf32, #tpu.memory_space<vmem>>, vector<8x128xf32>
    tpu.vector_store %arg7[%c0_6, %c0_7], %7 {strides = array<i32>} : memref<8x128xf32, #tpu.memory_space<vmem>>, vector<8x128xf32>,
    %c0_i32_8 = arith.constant 0 : i32
    %9 = arith.cmpi eq, %arg2, %c0_i32_8 : i32
    %10 = arith.extui %9 : i1 to i32
    %c0_i32_9 = arith.constant 0 : i32
    %11 = arith.cmpi ne, %10, %c0_i32_9 : i32
    scf.if %11 {
      %c0_10 = arith.constant 0 : index
      %c0_11 = arith.constant 0 : index
      %12 = vector.load %arg7[%c0_10, %c0_11] : memref<8x128xf32, #tpu.memory_space<vmem>>, vector<8x128xf32>
      %cst_12 = arith.constant 0.0883883461 : f32
      %13 = vector.broadcast %cst_12 : f32 to vector<8x128xf32>
      %14 = arith.mulf %12, %13 : vector<8x128xf32>
      %c0_13 = arith.constant 0 : index
      %c0_14 = arith.constant 0 : index
      %15 = vector.load %arg5[%c0_13, %c0_14] : memref<1x128xf32, #tpu.memory_space<vmem>>, vector<1x128xf32>
      %16 = vector.broadcast %15 : vector<1x128xf32> to vector<8x128xf32>
      %17 = arith.addf %14, %16 : vector<8x128xf32>
      %c0_15 = arith.constant 0 : index
      %c0_16 = arith.constant 0 : index
      %18 = vector.load %arg6[%c0_15, %c0_16] : memref<8x128xf32, #tpu.memory_space<vmem>>, vector<8x128xf32>
      tpu.vector_store %arg6[%c0_15, %c0_16], %17 {strides = array<i32>} : memref<8x128xf32, #tpu.memory_space<vmem>>, vector<8x128xf32>,
    } else {
    }
    return
  }
  func.func @transform_0(%arg0: i32, %arg1: i32, %arg2: i32) -> (i32, i32) {
    %c0_i32 = arith.constant 0 : i32
    return %arg0, %arg2 : i32, i32
  }
  func.func @transform_1(%arg0: i32, %arg1: i32, %arg2: i32) -> (i32, i32) {
    %c0_i32 = arith.constant 0 : i32
    return %arg1, %arg2 : i32, i32
  }
  func.func @transform_2(%arg0: i32, %arg1: i32, %arg2: i32) -> (i32, i32) {
    %c0_i32 = arith.constant 0 : i32
    %c0_i32_0 = arith.constant 0 : i32
    return %c0_i32, %arg1 : i32, i32
  }
  func.func @transform_3(%arg0: i32, %arg1: i32, %arg2: i32) -> (i32, i32) {
    %c0_i32 = arith.constant 0 : i32
    return %arg0, %arg1 : i32, i32
  }
}

</mosaic_0001>

<bundles_post_ra>
// kernel: tpu_custom_call.1
= control target key start
LH: loop header
LB: loop body
LE: loop exit
PB: predicated region body
PF: predicated region fallthrough
CT: control target
= control target key end

     0   :  { %8 = vsyncpa [#allocation4], 0  ;;  %s240_s0 = inlined_call_operand.hbm [shape: f32[8,128], index: 0, kind: input, shape index: {}]   ;;  %s241_s1 = inlined_call_operand.hbm [shape: f32[128,128], index: 1, kind: input, shape index: {}]   ;;  %s242_s2 = inlined_call_operand.vmem [shape: f32[1,128], index: 2, kind: input, shape index: {}]   ;;  %s243_s3 = inlined_call_operand.hbm [shape: f32[8,128], index: 3, kind: output, shape index: {}]  }
   0x1   :  { %9 = vsyncpa [#allocation7], 0 }
   0x2   :  { %10 = vsyncpa [#allocation5], 0  ;;  %s16_s14 = sshll.u32 %s240_s0, 4  ;;  %s203_s15 = smov [#allocation3]   ;;  %s17_s14 = int_to_ptr.hbm [resolvable:$true] %s16_s14 }
   0x3   :  { %s18_s16 = sshll.u32 %s203_s15, 4  ;;  %s26_s19 = sshll.u32 %s241_s1, 4  ;;  %s19_s16 = int_to_ptr.vmem [resolvable:$true] %s18_s16  ;;  %s27_s19 = int_to_ptr.hbm [resolvable:$true] %s26_s19 }
   0x4   :  { %21 = dma.hbm_to_vmem [thread:$0]  %s17_s14, 128, %s19_s16, [#allocation4]  }
   0x5   :  { %s204_s20 = smov [#allocation6]   ;;  %s205_s22 = smov 128  }
   0x6   :  { %s28_s21 = sshll.u32 %s204_s20, 4  ;;  %s206_s23 = smov 8   ;;  %s29_s21 = int_to_ptr.vmem [resolvable:$true] %s28_s21 }
   0x7   :  { %34 = dma.hbm_to_vmem [thread:$0]  %s27_s19, 2048, %s29_s21, [#allocation7], %s205_s22, %s205_s22, %s206_s23  }
   0x8   :  { %197 = dma.done.wait [#allocation4], 128  }
   0x9   :  { %198 = vsyncadd [#allocation4], 4294967168 }
   0xa   :  { %199 = dma.done.wait [#allocation7], 2048  }
   0xb   :  { %200 = vsyncadd [#allocation7], 4294965248  ;;  %v67_v0 = vld [vmem:[#allocation6 + $0x78] sm:$0xff]  ;;  %v66_v1 = vld [vmem:[#allocation6 + $0x70] sm:$0xff]  ;;  %s207_s24 = smov [#allocation8]   ;;  %s108_s28 = sshll.u32 %s243_s3, 4  ;;  %s109_s28 = int_to_ptr.hbm [resolvable:$true] %s108_s28 }
   0xc   :  { %68 = vmatpush.xpose.msra.mxu0 %v67_v0  ;;  %v65_v2 = vld [vmem:[#allocation6 + $0x68] sm:$0xff]  ;;  %v64_v3 = vld [vmem:[#allocation6 + $0x60] sm:$0xff]  ;;  %v63_v4 = vld [vmem:[#allocation6 + $0x58] sm:$0xff]  ;;  %s106_s25 = sshll.u32 %s207_s24, 4  ;;  %s107_s25 = int_to_ptr.vmem [resolvable:$true] %s106_s25 }
   0xd   :  { %v62_v5 = vld [vmem:[#allocation6 + $0x50] sm:$0xff]  ;;  %v61_v6 = vld [vmem:[#allocation6 + $0x48] sm:$0xff]  ;;  %v60_v7 = vld [vmem:[#allocation6 + $0x40] sm:$0xff] }
   0xe   :  { %v59_v8 = vld [vmem:[#allocation6 + $0x38] sm:$0xff]  ;;  %v58_v9 = vld [vmem:[#allocation6 + $0x30] sm:$0xff]  ;;  %v57_v10 = vld [vmem:[#allocation6 + $0x28] sm:$0xff] }
   0xf   :  { %v56_v11 = vld [vmem:[#allocation6 + $0x20] sm:$0xff]  ;;  %v55_v12 = vld [vmem:[#allocation6 + $0x18] sm:$0xff]  ;;  %v54_v13 = vld [vmem:[#allocation6 + $0x10] sm:$0xff] }
  0x10   :  { %69 = vmatpush.xpose.msra.mxu0 %v66_v1  ;;  %v53_v14 = vld [vmem:[#allocation6 + $0x8] sm:$0xff]  ;;  %v52_v15 = vld [vmem:[#allocation6] sm:$0xff]  ;;  %v51_v16 = vld [vmem:[#allocation3] sm:$0xff] }
  0x11   :  { %v124_v17 = vld [vmem:[%s242_s2] ss:$0 sm:$0xff] }
  0x14   :  { %70 = vmatpush.xpose.msra.mxu0 %v65_v2 }
  0x18   :  { %71 = vmatpush.xpose.msra.mxu0 %v64_v3 }
  0x1c   :  { %72 = vmatpush.xpose.msra.mxu0 %v63_v4 }
  0x20   :  { %73 = vmatpush.xpose.msra.mxu0 %v62_v5 }
  0x24   :  { %74 = vmatpush.xpose.msra.mxu0 %v61_v6 }
  0x28   :  { %75 = vmatpush.xpose.msra.mxu0 %v60_v7 }
  0x2c   :  { %76 = vmatpush.xpose.msra.mxu0 %v59_v8 }
  0x30   :  { %77 = vmatpush.xpose.msra.mxu0 %v58_v9 }
  0x34   :  { %78 = vmatpush.xpose.msra.mxu0 %v57_v10 }
  0x38   :  { %79 = vmatpush.xpose.msra.mxu0 %v56_v11 }
  0x3c   :  { %80 = vmatpush.xpose.msra.mxu0 %v55_v12 }
  0x40   :  { %81 = vmatpush.xpose.msra.mxu0 %v54_v13 }
  0x44   :  { %82 = vmatpush.xpose.msra.mxu0 %v53_v14 }
  0x48   :  { %83 = vmatpush.xpose.msra.mxu0 %v52_v15 }
  0x4b   :  { %84 = vmatmul.f32.vlgmr.msra.gmra.mxu0 %v51_v16 }
  0xc8   :  { %v85_v18 = vpop.f32.mrf.mxu0 }
  0xc9   :  { %v94_v19 = vmul.f32 0.088388346, %v85_v18 }
  0xcb   :  { %v99_v20 = vadd.f32 %v124_v17, %v94_v19 }
  0xcd   :  { %100 = vst [vmem:[#allocation8] sm:$0xff] %v99_v20 }
  0xce   :  { %111 = dma.vmem_to_hbm [thread:$0]  %s107_s25, 128, %s109_s28, [#allocation5]  }
  0xcf   :  { %201 = dma.done.wait [#allocation5], 128  }
  0xd0   :  { %202 = vsyncadd [#allocation5], 4294967168 }
  0xd1   :  { %116 = vsyncpa [#allocation4], 1 }
  0xd2   :  { %117 = vsyncpa [#allocation7], 1 }
  0xd3   :  { %118 = vsyncpa [#allocation5], 1 }

</bundles_post_ra>
